<compile_context>
chip_gen: v5e
topology: v5e:2x2
jax: 0.10.0
libtpu: 0.0.40
codegen_flags: <defaults>
</compile_context>

<pallas_src>
import functools
import math

import jax
import jax.numpy as jnp
import numpy as np
from jax import lax
from jax.experimental import pallas as pl
from jax.experimental.pallas import tpu as pltpu

_LANE = 128
_SUBLANE = 8

_ROLL_NP_CONVENTION = None  # lazily probed on device; None = unknown


def _round_up(n: int, m: int) -> int:
    return ((n + m - 1) // m) * m


# --------------------------- roll-direction probe ---------------------------


def _probe_roll_kernel(x_ref, o_ref):
    o_ref[...] = pltpu.roll(x_ref[...], 1, axis=1)


def detect_roll_convention() -> bool:
    """True iff pltpu.roll follows np.roll semantics (out[i] = in[i - shift]).

    Runs a tiny one-off probe kernel the first time it is called eagerly and
    caches the answer.  Must be called outside jit; under a trace the wrapper
    falls back to assuming np.roll semantics.
    """
    global _ROLL_NP_CONVENTION
    if _ROLL_NP_CONVENTION is None:
        probe = jnp.broadcast_to(
            lax.iota(jnp.float32, _LANE)[None, :], (_SUBLANE, _LANE))
        rolled = pl.pallas_call(
            _probe_roll_kernel,
            out_shape=jax.ShapeDtypeStruct((_SUBLANE, _LANE), jnp.float32),
        )(probe)
        _ROLL_NP_CONVENTION = bool(np.asarray(jax.device_get(rolled))[0, 1] == 0.0)
    return _ROLL_NP_CONVENTION


def _roll_convention_is_np() -> bool:
    if _ROLL_NP_CONVENTION is not None:
        return _ROLL_NP_CONVENTION
    try:
        return detect_roll_convention()
    except Exception:           # called under a trace -> assume np.roll semantics
        return True


# ------------------------------ tiling helpers -------------------------------


def _pick_k_tile(K: int, W: int, target: int) -> int:
    """Reduction (K) tile: multiple of lcm(2W, 128) dividing K (so no 2x2
    window straddles a lane tile), as large as possible but <= target."""
    step = (2 * W) * _LANE // math.gcd(2 * W, _LANE)          # lcm(2W, 128)
    if K % step != 0:
        # TODO(synk): add a K-padding path for C*H*W not a multiple of lcm(2W,128).
        raise NotImplementedError(
            f"K=C*H*W={K} must be a multiple of lcm(2W,128)={step}")
    best = step
    cand = step
    limit = min(K, max(target, step))
    while cand <= limit:
        if K % cand == 0:
            best = cand
        cand += step
    return best


def _pick_batch_tile(B: int) -> int:
    """Batch tile: a multiple-of-8 divisor of B (<=128), preferring >=2 tiles so
    both v7x TensorCores get work; falls back to the full batch as one block
    (legal: full-dim block) when B is not a multiple of 8 -> no x padding."""
    if B % _SUBLANE != 0:
        # TODO(synk): for large ragged batches, pad the batch upstream instead.
        return B
    divs = [t for t in range(_SUBLANE, min(B, 128) + 1, _SUBLANE) if B % t == 0]
    tb = divs[-1]
    if B // tb < 2:
        for t in reversed(divs):
            if B // t >= 2:
                tb = t
                break
    return tb


def _expand_pool_weights(w_pool, C, H, W, ncp):
    """Scatter the (F, NC) pooled-feature classifier rows to the window-base
    lanes of the flattened (C*H*W,) x layout; exact-zero rows elsewhere, so the
    roll-aligned pooled values can be consumed without any lane compaction."""
    F, NC = w_pool.shape
    H2, W2 = H // 2, W // 2
    f = np.arange(F)
    c, rem = f // (H2 * W2), f % (H2 * W2)
    base = c * (H * W) + (rem // W2) * (2 * W) + (rem % W2) * 2   # top-left lane
    w = jnp.zeros((C * H * W, ncp), jnp.bfloat16)
    return w.at[base, :NC].set(w_pool.astype(jnp.bfloat16))


# --------------------------------- kernel ------------------------------------


def _cascading_head_kernel(x_ref, w_exp_ref, prev_ref, w_prev_ref, bias_ref,
                           alpha_ref, out_ref, acc_ref, *,
                           win_w, tk, roll_np, w_resident):
    # x_ref:      (TB, TK)   native-layout x tile (f32 or bf16), streamed
    # w_exp_ref:  (K, NCP) resident  or  (TK, NCP) streamed   bf16 expanded weights
    # prev_ref:   (TB, NC)   previous classifier output tile
    # w_prev_ref: (NC, NCP)  bf16 classifier columns for prev_out (resident)
    # bias_ref:   (1, NCP)   f32
    # alpha_ref:  (1, 1)     f32 SMEM scalar
    # out_ref:    (TB, NCP)  f32
    # acc_ref:    (TB, NCP)  f32 VMEM accumulator, persists over the K grid axis
    k = pl.program_id(1)

    @pl.when(k == 0)
    def _init():
        # K-invariant contribution folded into the accumulator init.
        acc_ref[...] = bias_ref[...] + jnp.dot(
            prev_ref[...].astype(jnp.bfloat16), w_prev_ref[...],
            preferred_element_type=jnp.float32)

    # ---- 2x2 window pooling: alignment on the XLU (roll), reduce on the VPU,
    # all in f32.  Window with top-left at lane b occupies lanes b, b+1, b+W,
    # b+W+1; aligning them onto lane b needs result[i] = x[i + off], which is a
    # rotation by (tk - off) under np.roll semantics (off under the opposite
    # convention).  Wrapped lanes are never window-base lanes, and every
    # non-base lane hits an exact-zero weight row below.
    xf = x_ref[...].astype(jnp.float32)                       # (TB, TK)
    mx = xf
    sm = xf
    for off in (1, win_w, win_w + 1):
        shift = (tk - off) if roll_np else off
        v = pltpu.roll(xf, shift, axis=1)
        mx = jnp.maximum(mx, v)                               # incremental max/sum
        sm = sm + v                                           # -> low vreg pressure

    if w_resident:
        start = pl.multiple_of(k * tk, tk)
        w_tile = w_exp_ref[pl.ds(start, tk), :]               # slice resident weights
    else:
        w_tile = w_exp_ref[...]

    alpha = alpha_ref[0, 0]
    beta = (1.0 - alpha) * 0.25                               # folds avg-pool's 1/4
    out_mx = jnp.dot(mx.astype(jnp.bfloat16), w_tile,
                     preferred_element_type=jnp.float32)
    out_sm = jnp.dot(sm.astype(jnp.bfloat16), w_tile,
                     preferred_element_type=jnp.float32)
    acc_ref[...] += alpha * out_mx + beta * out_sm

    @pl.when(k == pl.num_programs(1) - 1)
    def _writeback():
        out_ref[...] = acc_ref[...].astype(out_ref.dtype)


# -------------------------------- wrapper -------------------------------------


def cascading_conv_head(x, prev_out, weight, bias, alpha, *,
                        k_tile_target=1024, w_pool_resident=None):
    """Pallas implementation of StandardCascadingConvHead.forward
    (return_features=False).  x may be f32 or bf16 (bf16 halves the dominant
    HBM stream); pooling is always done in f32."""
    B, C, H, W = x.shape
    if H % 2 or W % 2:
        # TODO(synk): odd H/W (MaxPool2d floor semantics) not implemented.
        raise NotImplementedError("2x2 pooling path requires even H and W")
    H2, W2 = H // 2, W // 2
    F = C * H2 * W2                     # pooled feature count
    K = C * H * W                       # flattened x length = 4F
    NC = prev_out.shape[-1]
    NCP = _round_up(max(NC, 1), _LANE)  # lane-dense (unmasked-store) output width

    TB = _pick_batch_tile(B)
    nb = B // TB
    TK = _pick_k_tile(K, W, k_tile_target)
    nk = K // TK

    # Expanded weights: keep the whole (K, NCP) matrix resident in VMEM when it
    # is small (DMA'd once; constant index map), otherwise stream (TK, NCP)
    # tiles per k-step.
    if w_pool_resident is None:
        w_pool_resident = (K * NCP * 2) <= 4 * 1024 * 1024

    # --- once-per-call prep (cache these at module init in a real model) -----
    x_flat = x.reshape(B, K)                                  # free row-major reshape
    wt = weight.T                                             # (F + NC, NC)
    w_exp = _expand_pool_weights(wt[:F], C, H, W, NCP)        # (K, NCP) bf16
    w_prev = jnp.zeros((NC, NCP), jnp.bfloat16).at[:, :NC].set(
        wt[F:].astype(jnp.bfloat16))
    bias_p = jnp.zeros((1, NCP), jnp.float32).at[0, :NC].set(
        bias.astype(jnp.float32))
    alpha_p = jnp.asarray(alpha, jnp.float32).reshape(1, 1)

    roll_np = _roll_convention_is_np()
    kernel = functools.partial(_cascading_head_kernel, win_w=W, tk=TK,
                               roll_np=roll_np, w_resident=w_pool_resident)

    if w_pool_resident:
        w_spec = pl.BlockSpec((K, NCP), lambda i, k: (0, 0))   # loaded once, kept
    else:
        w_spec = pl.BlockSpec((TK, NCP), lambda i, k: (k, 0))  # streamed per k

    grid_spec = pltpu.PrefetchScalarGridSpec(
        num_scalar_prefetch=0,
        grid=(nb, nk),                                        # (batch tiles, K tiles)
        in_specs=[
            pl.BlockSpec((TB, TK), lambda i, k: (i, k)),      # x, streamed, native
            w_spec,                                           # expanded pool weights
            pl.BlockSpec((TB, NC), lambda i, k: (i, 0)),      # prev_out
            pl.BlockSpec((NC, NCP), lambda i, k: (0, 0)),     # W_prev (resident)
            pl.BlockSpec((1, NCP), lambda i, k: (0, 0)),      # bias (resident)
            pl.BlockSpec((1, 1), lambda i, k: (0, 0),
                         memory_space=pltpu.MemorySpace.SMEM),  # alpha scalar
        ],
        out_specs=pl.BlockSpec((TB, NCP), lambda i, k: (i, 0)),
        scratch_shapes=[pltpu.VMEM((TB, NCP), jnp.float32)],   # f32 accumulator
    )

    flops = int(4 * B * K * NCP + 2 * B * NC * NCP + 8 * B * K)
    bytes_accessed = int(B * K * x_flat.dtype.itemsize
                         + K * NCP * 2 * (1 if w_pool_resident else nb)
                         + B * NC * prev_out.dtype.itemsize
                         + NC * NCP * 2 + NCP * 4 + 4
                         + B * NCP * 4)

    out = pl.pallas_call(
        kernel,
        grid_spec=grid_spec,
        out_shape=jax.ShapeDtypeStruct((B, NCP), jnp.float32),
        compiler_params=pltpu.CompilerParams(
            dimension_semantics=("parallel", "arbitrary"),    # batch axis -> megacore
            vmem_limit_bytes=32 * 1024 * 1024,                # v7x-safe scoped limit
        ),
        cost_estimate=pl.CostEstimate(
            flops=flops, transcendentals=0, bytes_accessed=bytes_accessed),
    )(x_flat, w_exp, prev_out, w_prev, bias_p, alpha_p)

    return out[:, :NC]                                        # drop lane padding


# ------------------------------- references -----------------------------------


def reference_forward(x, prev_out, weight, bias, alpha):
    """Plain-JAX f32 reference matching the PyTorch module."""
    B, C, H, W = x.shape
    xr = x.reshape(B, C, H // 2, 2, W // 2, 2)
    mx = xr.max(axis=(3, 5))
    av = xr.mean(axis=(3, 5))
    pool = alpha * mx + (1.0 - alpha) * av
    cls_in = jnp.concatenate([pool.reshape(B, -1), prev_out], axis=1)
    return jnp.dot(cls_in, weight.T, precision=lax.Precision.HIGHEST) + bias


def reference_forward_bf16(x, prev_out, weight, bias, alpha):
    """Numerics-matched reference: f32 pooling, bf16 MXU inputs, f32 accumulate."""
    B, C, H, W = x.shape
    F = C * (H // 2) * (W // 2)
    xr = x.astype(jnp.float32).reshape(B, C, H // 2, 2, W // 2, 2)
    mx = xr.max(axis=(3, 5)).reshape(B, F)
    sm = xr.sum(axis=(3, 5)).reshape(B, F)
    wt = weight.T
    wp = wt[:F].astype(jnp.bfloat16)
    a = jnp.asarray(alpha, jnp.float32).reshape(())
    out = a * jnp.dot(mx.astype(jnp.bfloat16), wp, preferred_element_type=jnp.float32)
    out = out + (1.0 - a) * 0.25 * jnp.dot(
        sm.astype(jnp.bfloat16), wp, preferred_element_type=jnp.float32)
    out = out + jnp.dot(prev_out.astype(jnp.bfloat16), wt[F:].astype(jnp.bfloat16),
                        preferred_element_type=jnp.float32)
    return out + bias


if __name__ == "__main__":
    # Shapes consistent with the module: x (B, C, H, W), prev_out (B, num_classes).
    B, C, H, W = 2, 4, 16, 16
    num_classes = 10
    num_input_features = C * H * W
    in_features = num_classes + num_input_features // 4        # 10 + 256 = 266

    key = jax.random.PRNGKey(0)
    kx, kp, kw, kb, ka = jax.random.split(key, 5)

    x = jax.random.normal(kx, (B, C, H, W), dtype=jnp.float32)
    prev_out = jax.random.normal(kp, (B, num_classes), dtype=jnp.float32)
    bound = 1.0 / math.sqrt(in_features)
    weight = jax.random.uniform(kw, (num_classes, in_features), jnp.float32,
                                -bound, bound)
    bias = jax.random.uniform(kb, (num_classes,), jnp.float32, -bound, bound)
    alpha = jax.random.uniform(ka, (1,), jnp.float32)           # nn.Parameter(torch.rand(1))

    detect_roll_convention()          # one-off device probe, done outside jit

    ref32 = reference_forward(x, prev_out, weight, bias, alpha)
    ref16 = reference_forward_bf16(x, prev_out, weight, bias, alpha)

    def check(out, r16, r32):
        e16 = float(jnp.max(jnp.abs(out - r16)))
        e32 = float(jnp.max(jnp.abs(out - r32)))
        assert jnp.allclose(out, r16, atol=2e-3, rtol=2e-3), f"bf16-matched err {e16}"
        assert jnp.allclose(out, r32, atol=5e-2, rtol=5e-2), f"f32 module err {e32}"

    # 1) default config: single K tile, resident expanded weights.
    out = jax.jit(cascading_conv_head)(x, prev_out, weight, bias, alpha)
    jax.block_until_ready(out)
    assert out.shape == (B, num_classes)
    check(out, ref16, ref32)

    # 2) multi-K-tile accumulation + streamed (non-resident) weight tiles.
    out2 = jax.jit(functools.partial(cascading_conv_head, k_tile_target=256,
                                     w_pool_resident=False))(
        x, prev_out, weight, bias, alpha)
    jax.block_until_ready(out2)
    check(out2, ref16, ref32)

    # 3) multi-batch-tile path (B=16 -> TB=8, nb=2 so both v7x cores get work).
    B2 = 16
    x2 = jax.random.normal(kx, (B2, C, H, W), dtype=jnp.float32)
    p2 = jax.random.normal(kp, (B2, num_classes), dtype=jnp.float32)
    out3 = jax.jit(functools.partial(cascading_conv_head, k_tile_target=256))(
        x2, p2, weight, bias, alpha)
    jax.block_until_ready(out3)
    check(out3, reference_forward_bf16(x2, p2, weight, bias, alpha),
          reference_forward(x2, p2, weight, bias, alpha))

    print("KERNEL_OK")
</pallas_src>

<mosaic_0001>
module attributes {stable_mosaic.version = 11 : i64} {
  func.func @_probe_roll_kernel(%arg0: memref<8x128xf32, #tpu.memory_space<vmem>>, %arg1: memref<8x128xf32, #tpu.memory_space<vmem>>) attributes {dimension_semantics = [], scalar_prefetch = 0 : i64, scratch_operands = 0 : i64, tpu.core_type = #tpu.core_type<tc>} {
    %c0 = arith.constant 0 : index
    %c0_0 = arith.constant 0 : index
    %0 = vector.load %arg0[%c0, %c0_0] : memref<8x128xf32, #tpu.memory_space<vmem>>, vector<8x128xf32>
    %c1_i32 = arith.constant 1 : i32
    %1 = tpu.dynamic_rotate %0 by %c1_i32 dim 1 : vector<8x128xf32>, i32 -> vector<8x128xf32>
    %c0_1 = arith.constant 0 : index
    %c0_2 = arith.constant 0 : index
    %2 = vector.load %arg1[%c0_1, %c0_2] : memref<8x128xf32, #tpu.memory_space<vmem>>, vector<8x128xf32>
    tpu.vector_store %arg1[%c0_1, %c0_2], %1 {strides = array<i32>} : memref<8x128xf32, #tpu.memory_space<vmem>>, vector<8x128xf32>,
    return
  }
}

</mosaic_0001>

<bundles_post_ra>
// kernel: tpu_custom_call.1
= control target key start
LH: loop header
LB: loop body
LE: loop exit
PB: predicated region body
PF: predicated region fallthrough
CT: control target
= control target key end

     0   :  { %6 = vsyncpa [#allocation3], 0  ;;  %s118_s0 = inlined_call_operand.hbm [shape: f32[8,128], index: 0, kind: input, shape index: {}]   ;;  %s119_s1 = inlined_call_operand.hbm [shape: f32[8,128], index: 1, kind: output, shape index: {}]  }
   0x1   :  { %7 = vsyncpa [#allocation4], 0  ;;  %s13_s8 = sshll.u32 %s118_s0, 4  ;;  %s99_s9 = smov [#allocation2]   ;;  %s14_s8 = int_to_ptr.hbm [resolvable:$true] %s13_s8 }
   0x2   :  { %s15_s10 = sshll.u32 %s99_s9, 4  ;;  %s16_s10 = int_to_ptr.vmem [resolvable:$true] %s15_s10 }
   0x3   :  { %18 = dma.hbm_to_vmem [thread:$0]  %s14_s8, 128, %s16_s10, [#allocation3]  }
   0x4   :  { %95 = dma.done.wait [#allocation3], 128  }
   0x5   :  { %96 = vsyncadd [#allocation3], 4294967168  ;;  %v23_v0 = vld [vmem:[#allocation2] sm:$0xff]  ;;  %s100_s11 = smov 1   ;;  %s101_s12 = smov [#allocation5]  }
   0x6   :  { %24 = vrot.lane.b32.xlu0 %v23_v0, %s100_s11  ;;  %s32_s13 = sshll.u32 %s101_s12, 4  ;;  %s34_s16 = sshll.u32 %s119_s1, 4  ;;  %s33_s13 = int_to_ptr.vmem [resolvable:$true] %s32_s13  ;;  %s35_s16 = int_to_ptr.hbm [resolvable:$true] %s34_s16 }
  0x78   :  { %v25_v1 = vpop.permute.xlu0 %24 }
  0x79   :  { %26 = vst [vmem:[#allocation5] sm:$0xff] %v25_v1 }
  0x7a   :  { %37 = dma.vmem_to_hbm [thread:$0]  %s33_s13, 128, %s35_s16, [#allocation4]  }
  0x7b   :  { %97 = dma.done.wait [#allocation4], 128  }
  0x7c   :  { %98 = vsyncadd [#allocation4], 4294967168 }
  0x7d   :  { %42 = vsyncpa [#allocation3], 1 }
  0x7e   :  { %43 = vsyncpa [#allocation4], 1 }

</bundles_post_ra>
